<compile_context>
chip_gen: v7x
topology: tpu7x:2x2x1
jax: 0.10.0
libtpu: 0.0.40
codegen_flags: <defaults>
</compile_context>

<pallas_src>
import functools

import numpy as np
import jax
import jax.numpy as jnp
from jax import lax
from jax.experimental import pallas as pl
from jax.experimental.pallas import tpu as pltpu

EPS = 1e-12


def _convblock_kernel(x_ref, p_ref, o_ref, stats_ref, *,
                      c_in, m, K, dilation, tl, n_l, l_out,
                      rows_per_chunk, n_pass, use_prelu, use_norm, eps):
    # x_ref:     (1, C_in, L_in)       whole (unpadded) sample, resident per sample
    # p_ref:     (C_out, K+3[+1])      packed params, row order j*C_in + ci
    # o_ref:     (1, C_out, TL)        one lane-dense output tile (packed row order)
    # stats_ref: SMEM (2,) f32         per-sample [sum, sum_of_squares]
    p = pl.program_id(1)               # pass index: 0 = stats (if norm), last = write
    l = pl.program_id(2)               # length-tile index
    c_out = c_in * m
    win = tl + (K - 1) * dilation      # haloed window width
    write_pass = n_pass - 1
    inv_n = 1.0 / float(c_out * l_out)

    valid_last = l_out - (n_l - 1) * tl            # static, in (0, tl]
    ragged = (n_l > 1) and (valid_last != tl)      # static python bool

    def conv_chunk(j, r0, nr, l0):
        """Depthwise conv (+bias, +PReLU) for input rows [r0, r0+nr) of
        expansion index j over one TL-wide output window at offset l0."""
        if not isinstance(l0, int):
            # dynamic offsets are always multiples of the (128-aligned) tile
            l0 = pl.multiple_of(l0, 128)
        row0 = j * c_in + r0                       # packed param / output row
        xwin = x_ref[0, r0:r0 + nr, pl.ds(l0, win)].astype(jnp.float32)
        w = p_ref[row0:row0 + nr, 0:K].astype(jnp.float32)
        # K-tap accumulation on a register-sized row chunk (no VMEM round trip)
        y = w[:, 0:1] * xwin[:, 0:tl]
        for k in range(1, K):
            s = k * dilation
            y = y + w[:, k:k + 1] * xwin[:, s:s + tl]
        y = y + p_ref[row0:row0 + nr, K:K + 1].astype(jnp.float32)
        if use_prelu:
            a = p_ref[row0:row0 + nr, K + 3:K + 4].astype(jnp.float32)
            y = jnp.where(y >= 0, y, a * y)
        return y, row0

    def stats_tile(l0, skip_cols):
        """Pass 0: accumulate per-sample sum / sum-of-squares for this tile.
        The first `skip_cols` columns (static) are excluded -- they are the
        overlap of the clamped ragged tail tile with the previous tile."""
        if skip_cols:
            col_ok = jax.lax.broadcasted_iota(jnp.int32, (1, tl), 1) >= skip_cols
        acc1 = jnp.zeros((1, tl), jnp.float32)
        acc2 = jnp.zeros((1, tl), jnp.float32)
        for j in range(m):
            for r0 in range(0, c_in, rows_per_chunk):
                nr = min(rows_per_chunk, c_in - r0)
                y, _ = conv_chunk(j, r0, nr, l0)
                if skip_cols:
                    y = jnp.where(col_ok, y, 0.0)
                acc1 = acc1 + jnp.sum(y, axis=0, keepdims=True)
                acc2 = acc2 + jnp.sum(y * y, axis=0, keepdims=True)
        # one cross-lane reduction + one SMEM read-modify-write per quantity
        # TODO(synk): Kahan-compensated accumulators if C_out*L_out gets huge.
        stats_ref[0] = stats_ref[0] + jnp.sum(acc1)
        stats_ref[1] = stats_ref[1] + jnp.sum(acc2)

    def write_tile(l0, skip_cols, n_store):
        """Write pass: recompute the tile, normalize with pass-0 stats, store
        columns [skip_cols, skip_cols + n_store) into o_ref[..., 0:n_store]."""
        if use_norm:
            mean = stats_ref[0] * inv_n
            var = jnp.maximum(stats_ref[1] * inv_n - mean * mean, 0.0)
            rstd = lax.rsqrt(var + eps)
        for j in range(m):
            for r0 in range(0, c_in, rows_per_chunk):
                nr = min(rows_per_chunk, c_in - r0)
                y, row0 = conv_chunk(j, r0, nr, l0)
                if use_norm:
                    g = p_ref[row0:row0 + nr, K + 1:K + 2].astype(jnp.float32)
                    b = p_ref[row0:row0 + nr, K + 2:K + 3].astype(jnp.float32)
                    sc = g * rstd
                    y = y * sc + (b - mean * sc)
                o_ref[0, row0:row0 + nr, 0:n_store] = (
                    y[:, skip_cols:skip_cols + n_store].astype(o_ref.dtype))

    if use_norm:
        # Zero the per-sample accumulators at the first stats step of each sample.
        @pl.when((p == 0) & (l == 0))
        def _():
            stats_ref[0] = jnp.float32(0.0)
            stats_ref[1] = jnp.float32(0.0)

    def do_pass(is_stats):
        def full_tile(l0):
            if is_stats:
                stats_tile(l0, 0)
            else:
                write_tile(l0, 0, tl)

        if n_l == 1:
            full_tile(0)
        elif not ragged:
            full_tile(l * tl)
        else:
            last_l0 = l_out - tl            # static; overlaps the previous tile
            skip = tl - valid_last          # static overlap width
            pl.when(l < n_l - 1)(lambda: full_tile(l * tl))
            if is_stats:
                pl.when(l == n_l - 1)(lambda: stats_tile(last_l0, skip))
            else:
                pl.when(l == n_l - 1)(
                    lambda: write_tile(last_l0, skip, valid_last))

    if use_norm:
        pl.when(p == 0)(lambda: do_pass(True))
        pl.when(p == write_pass)(lambda: do_pass(False))
    else:
        do_pass(False)


def conv_block_1d(x, weight, bias, gamma=None, beta=None, prelu_w=None, *,
                  kernel_size=3, stride=1, dilation=1, nonlinear=None,
                  norm=True, causal=False, eps=EPS, tile_l=1024):
    """Pallas TPU implementation of ConvBlock1d.forward.

    x:       (B, C_in, L_in)
    weight:  (C_out, 1, K)   nn.Conv1d weight with groups=C_in
    bias:    (C_out,)
    gamma, beta: (C_out,)    gLN affine params (used when norm=True)
    prelu_w: (1,) or (C_out,)  PReLU slope (used when nonlinear == 'prelu')
    """
    assert stride == 1   # TODO(synk): stride > 1 not implemented
    assert not causal    # TODO(synk): causal cLN (cumulative layer norm) not implemented; gLN only
    if nonlinear not in (None, 'prelu'):
        raise ValueError('Not support {}'.format(nonlinear))

    B, c_in, l_in = x.shape
    c_out = weight.shape[0]
    assert weight.shape == (c_out, 1, kernel_size)
    assert c_out % c_in == 0
    m = c_out // c_in
    l_out = l_in - dilation * (kernel_size - 1)
    assert l_out > 0

    use_prelu = (nonlinear == 'prelu')
    use_norm = bool(norm)
    n_pass = 2 if use_norm else 1

    # ---- length tiling: lane-dense tiles; NO host-side pad of x, NO output
    # ---- slice -- the ragged tail is handled inside the kernel.
    tile_l = max(128, (int(tile_l) // 128) * 128)
    if l_out <= tile_l:
        tl, n_l = l_out, 1
    else:
        tl = tile_l
        n_l = int(pl.cdiv(l_out, tl))

    # ---- register-block the channel rows so the K-tap f32 accumulator stays in
    # ---- vregs (no per-tap store/reload of the full tile).
    rows_per_chunk = int(min(c_in, max(8, ((8192 // max(tl, 1)) // 8) * 8)))

    # ---- pack per-channel params into one small resident block:
    # ----   row (j*C_in + ci)  <->  output channel co = ci*m + j
    # ----   cols: [w_0 .. w_{K-1} | bias | gamma | beta | (prelu slope)]
    if gamma is None:
        gamma = jnp.ones((c_out,), jnp.float32)
    if beta is None:
        beta = jnp.zeros((c_out,), jnp.float32)
    cols = [weight.reshape(c_out, kernel_size).astype(jnp.float32),
            bias.reshape(c_out, 1).astype(jnp.float32),
            jnp.asarray(gamma, jnp.float32).reshape(c_out, 1),
            jnp.asarray(beta, jnp.float32).reshape(c_out, 1)]
    if use_prelu:
        if prelu_w is None:
            prelu_w = jnp.full((1,), 0.25, jnp.float32)
        a = jnp.broadcast_to(
            jnp.asarray(prelu_w, jnp.float32).reshape(-1)[:, None], (c_out, 1))
        cols.append(a)
    params = jnp.concatenate(cols, axis=1)           # (C_out, K+3 [+1])
    if m > 1:
        # Group rows by expansion index j so each group is a dense (C_in, K+4)
        # slab the kernel processes fully vectorized over C_in sublanes.
        perm = np.arange(c_out).reshape(c_in, m).T.reshape(-1)
        params = params[perm]

    kern = functools.partial(
        _convblock_kernel,
        c_in=c_in, m=m, K=kernel_size, dilation=dilation,
        tl=tl, n_l=n_l, l_out=l_out, rows_per_chunk=rows_per_chunk,
        n_pass=n_pass, use_prelu=use_prelu, use_norm=use_norm, eps=eps)

    last = n_pass - 1

    def x_map(b, p, l):      # whole (unpadded) sample: fetched once per sample
        return (b, 0, 0)

    def p_map(b, p, l):      # resident for the whole call
        return (0, 0)

    if use_norm:
        def o_map(b, p, l):
            # Park on tile 0 during the stats pass (nothing is stored there);
            # the write pass then visits every tile exactly once.  Final HBM
            # contents are correct even if the parked buffer were written back,
            # because the write pass revisits tile 0 before moving on.
            return (b, 0, jnp.where(p == last, l, 0))
    else:
        def o_map(b, p, l):
            return (b, 0, l)

    # ---- VMEM budget (generation-aware cap; v7x has 64 MiB per TensorCore).
    itemsize = x.dtype.itemsize
    need = (2 * c_in * l_in * itemsize          # resident, double-buffered x
            + 2 * c_out * tl * itemsize         # double-buffered output tiles
            + params.size * 4
            + (8 << 20))                        # f32 working set + headroom
    try:
        cap = int(pltpu.get_tpu_info().vmem_capacity_bytes)
    except Exception:
        cap = 64 << 20                          # be conservative if unknown
    vmem_limit = int(min(max(need, 32 << 20), max(cap - (12 << 20), 16 << 20)))

    cost = pl.CostEstimate(
        flops=int(2 * kernel_size * B * c_out * l_out * n_pass),
        transcendentals=int(B),
        bytes_accessed=int(B * c_in * l_in * itemsize
                           + B * c_out * l_out * itemsize
                           + params.size * 4))

    out = pl.pallas_call(
        kern,
        out_shape=jax.ShapeDtypeStruct((B, c_out, l_out), x.dtype),
        grid=(B, n_pass, n_l),
        in_specs=[
            pl.BlockSpec((1, c_in, l_in), x_map),
            pl.BlockSpec(params.shape, p_map),
        ],
        out_specs=pl.BlockSpec((1, c_out, tl), o_map),
        scratch_shapes=[pltpu.SMEM((2,), jnp.float32)],
        compiler_params=pltpu.CompilerParams(
            dimension_semantics=("parallel", "arbitrary", "arbitrary"),
            vmem_limit_bytes=vmem_limit),
        cost_estimate=cost,
    )(x, params)

    if m > 1:
        # Kernel channel order is j*C_in + ci; restore co = ci*m + j.  Only the
        # (C_in, m) swap is a real copy and it only exists on the m > 1 path.
        # TODO(synk): kill this copy with a sublane-strided in-kernel store
        #             (o_ref[0, pl.ds(r0*m + j, nr, stride=m), :]) once that
        #             lowering is verified on all target generations.
        out = out.reshape(B, m, c_in, l_out).transpose(0, 2, 1, 3)
        out = out.reshape(B, c_out, l_out)
    return out


def _reference(x, weight, bias, gamma, beta, prelu_w, *,
               kernel_size=3, dilation=1, nonlinear=None, norm=True, eps=EPS):
    """Pure-JAX reference mirroring the PyTorch forward (for verification)."""
    B, c_in, l_in = x.shape
    c_out = weight.shape[0]
    m = c_out // c_in
    l_out = l_in - dilation * (kernel_size - 1)
    x_exp = jnp.repeat(x, m, axis=1)
    y = jnp.zeros((B, c_out, l_out), jnp.float32)
    for k in range(kernel_size):
        s = k * dilation
        y = y + weight[:, 0, k][None, :, None] * x_exp[:, :, s:s + l_out]
    y = y + bias[None, :, None]
    if nonlinear == 'prelu':
        y = jnp.where(y >= 0, y, prelu_w.reshape(-1)[0] * y)
    if norm:
        mean = jnp.mean(y, axis=(1, 2), keepdims=True)
        var = jnp.mean((y - mean) ** 2, axis=(1, 2), keepdims=True)
        y = gamma[None, :, None] * (y - mean) / jnp.sqrt(var + eps) + beta[None, :, None]
    return y


if __name__ == "__main__":
    def run_case(case_idx, B, c_in, c_out, L, K, dilation, nonlinear, norm,
                 tile_l=1024):
        k = jax.random.fold_in(jax.random.PRNGKey(0), case_idx)
        kx, kw, kb, kg, ke = jax.random.split(k, 5)
        x = jax.random.normal(kx, (B, c_in, L), dtype=jnp.float32)
        weight = 0.1 * jax.random.normal(kw, (c_out, 1, K), dtype=jnp.float32)
        bias = 0.1 * jax.random.normal(kb, (c_out,), dtype=jnp.float32)
        gamma = 1.0 + 0.1 * jax.random.normal(kg, (c_out,), dtype=jnp.float32)
        beta = 0.1 * jax.random.normal(ke, (c_out,), dtype=jnp.float32)
        prelu_w = jnp.full((1,), 0.25, dtype=jnp.float32)

        out = conv_block_1d(x, weight, bias, gamma, beta, prelu_w,
                            kernel_size=K, stride=1, dilation=dilation,
                            nonlinear=nonlinear, norm=norm, causal=False,
                            eps=EPS, tile_l=tile_l)
        out = jax.block_until_ready(out)

        ref = _reference(x, weight, bias, gamma, beta, prelu_w,
                         kernel_size=K, dilation=dilation,
                         nonlinear=nonlinear, norm=norm, eps=EPS)
        l_out = L - dilation * (K - 1)
        assert out.shape == (B, c_out, l_out), (out.shape, (B, c_out, l_out))
        err = float(jnp.max(jnp.abs(out - ref)))
        assert err < 5e-4, (case_idx, err)

    # 1) grouped conv with channel expansion (m=2) + gLN
    run_case(1, B=2, c_in=4, c_out=8, L=16, K=3, dilation=1,
             nonlinear=None, norm=True)
    # 2) depthwise (m=1) with dilation + PReLU + gLN
    run_case(2, B=2, c_in=8, c_out=8, L=16, K=3, dilation=2,
             nonlinear='prelu', norm=True)
    # 3) multi-tile ragged length path (lane-dense tiles + in-kernel tail)
    run_case(3, B=2, c_in=8, c_out=8, L=300, K=3, dilation=1,
             nonlinear='prelu', norm=True, tile_l=128)
    # 4) no-norm single-pass path with expansion (m=2)
    run_case(4, B=2, c_in=4, c_out=8, L=16, K=3, dilation=1,
             nonlinear='prelu', norm=False)
    # 5) larger depthwise case exercising row chunking + ragged multi-tile gLN
    run_case(5, B=1, c_in=32, c_out=32, L=1200, K=3, dilation=2,
             nonlinear='prelu', norm=True, tile_l=512)

    print("KERNEL_OK")
</pallas_src>

<mosaic_0001>
module attributes {stable_mosaic.version = 11 : i64} {
  func.func @_convblock_kernel(%arg0: i32, %arg1: i32, %arg2: i32, %arg3: memref<1x4x16xf32, #tpu.memory_space<vmem>>, %arg4: memref<8x6xf32, #tpu.memory_space<vmem>>, %arg5: memref<1x8x14xf32, #tpu.memory_space<vmem>>, %arg6: memref<2xf32, #tpu.memory_space<smem>>) attributes {dimension_semantics = [#tpu.dimension_semantics<parallel>, #tpu.dimension_semantics<arbitrary>, #tpu.dimension_semantics<arbitrary>], iteration_bounds = array<i64: 2, 2, 1>, scalar_prefetch = 0 : i64, scratch_operands = 1 : i64, tpu.core_type = #tpu.core_type<tc>, window_params = [{transform_indices = @transform_0, window_bounds = array<i64: 1, 4, 16>}, {pipeline_mode = #tpu.pipeline_mode<synchronous>, transform_indices = @transform_1, window_bounds = array<i64: 8, 6>}, {transform_indices = @transform_2, window_bounds = array<i64: 1, 8, 14>}]} {
    %c0_i32 = arith.constant 0 : i32
    %0 = arith.cmpi eq, %arg1, %c0_i32 : i32
    %c0_i32_0 = arith.constant 0 : i32
    %1 = arith.cmpi eq, %arg2, %c0_i32_0 : i32
    %2 = arith.andi %0, %1 : i1
    %3 = arith.extui %2 : i1 to i32
    %c0_i32_1 = arith.constant 0 : i32
    %4 = arith.cmpi ne, %3, %c0_i32_1 : i32
    scf.if %4 {
      %cst = arith.constant 0.000000e+00 : f32
      %c0 = arith.constant 0 : index
      %11 = memref.load %arg6[%c0] : memref<2xf32, #tpu.memory_space<smem>>
      memref.store %cst, %arg6[%c0] : memref<2xf32, #tpu.memory_space<smem>>
      %cst_5 = arith.constant 0.000000e+00 : f32
      %c1 = arith.constant 1 : index
      %12 = memref.load %arg6[%c1] : memref<2xf32, #tpu.memory_space<smem>>
      memref.store %cst_5, %arg6[%c1] : memref<2xf32, #tpu.memory_space<smem>>
    } else {
    }
    %c0_i32_2 = arith.constant 0 : i32
    %5 = arith.cmpi eq, %arg1, %c0_i32_2 : i32
    %6 = arith.extui %5 : i1 to i32
    %c0_i32_3 = arith.constant 0 : i32
    %7 = arith.cmpi ne, %6, %c0_i32_3 : i32
    scf.if %7 {
      %cst = arith.constant 0.000000e+00 : f32
      %11 = vector.broadcast %cst : f32 to vector<1x14xf32>
      %cst_5 = arith.constant 0.000000e+00 : f32
      %12 = vector.broadcast %cst_5 : f32 to vector<1x14xf32>
      %c0 = arith.constant 0 : index
      %c0_6 = arith.constant 0 : index
      %c0_7 = arith.constant 0 : index
      %13 = vector.load %arg3[%c0, %c0_6, %c0_7] : memref<1x4x16xf32, #tpu.memory_space<vmem>>, vector<1x4x16xf32>
      %14 = vector.shape_cast %13 : vector<1x4x16xf32> to vector<4x16xf32>
      %c0_8 = arith.constant 0 : index
      %c0_9 = arith.constant 0 : index
      %15 = vector.load %arg4[%c0_8, %c0_9] : memref<8x6xf32, #tpu.memory_space<vmem>>, vector<4x3xf32>
      %16 = vector.extract_strided_slice %15 {offsets = [0, 0], sizes = [4, 1], strides = [1, 1]} : vector<4x3xf32> to vector<4x1xf32>
      %17 = vector.extract_strided_slice %14 {offsets = [0, 0], sizes = [4, 14], strides = [1, 1]} : vector<4x16xf32> to vector<4x14xf32>
      %18 = vector.broadcast %16 : vector<4x1xf32> to vector<4x14xf32>
      %19 = arith.mulf %18, %17 : vector<4x14xf32>
      %20 = vector.extract_strided_slice %15 {offsets = [0, 1], sizes = [4, 1], strides = [1, 1]} : vector<4x3xf32> to vector<4x1xf32>
      %21 = vector.extract_strided_slice %14 {offsets = [0, 1], sizes = [4, 14], strides = [1, 1]} : vector<4x16xf32> to vector<4x14xf32>
      %22 = vector.broadcast %20 : vector<4x1xf32> to vector<4x14xf32>
      %23 = arith.mulf %22, %21 : vector<4x14xf32>
      %24 = arith.addf %19, %23 : vector<4x14xf32>
      %25 = vector.extract_strided_slice %15 {offsets = [0, 2], sizes = [4, 1], strides = [1, 1]} : vector<4x3xf32> to vector<4x1xf32>
      %26 = vector.extract_strided_slice %14 {offsets = [0, 2], sizes = [4, 14], strides = [1, 1]} : vector<4x16xf32> to vector<4x14xf32>
      %27 = vector.broadcast %25 : vector<4x1xf32> to vector<4x14xf32>
      %28 = arith.mulf %27, %26 : vector<4x14xf32>
      %29 = arith.addf %24, %28 : vector<4x14xf32>
      %c0_10 = arith.constant 0 : index
      %c3 = arith.constant 3 : index
      %30 = vector.load %arg4[%c0_10, %c3] : memref<8x6xf32, #tpu.memory_space<vmem>>, vector<4x1xf32>
      %31 = vector.broadcast %30 : vector<4x1xf32> to vector<4x14xf32>
      %32 = arith.addf %29, %31 : vector<4x14xf32>
      %cst_11 = arith.constant dense<0.000000e+00> : vector<14xf32>
      %33 = vector.multi_reduction <add>, %32, %cst_11 [0] : vector<4x14xf32> to vector<14xf32>
      %34 = vector.shape_cast %33 : vector<14xf32> to vector<1x14xf32>
      %35 = arith.addf %11, %34 : vector<1x14xf32>
      %36 = arith.mulf %32, %32 : vector<4x14xf32>
      %cst_12 = arith.constant dense<0.000000e+00> : vector<14xf32>
      %37 = vector.multi_reduction <add>, %36, %cst_12 [0] : vector<4x14xf32> to vector<14xf32>
      %38 = vector.shape_cast %37 : vector<14xf32> to vector<1x14xf32>
      %39 = arith.addf %12, %38 : vector<1x14xf32>
      %c0_13 = arith.constant 0 : index
      %c0_14 = arith.constant 0 : index
      %c0_15 = arith.constant 0 : index
      %40 = vector.load %arg3[%c0_13, %c0_14, %c0_15] : memref<1x4x16xf32, #tpu.memory_space<vmem>>, vector<1x4x16xf32>
      %41 = vector.shape_cast %40 : vector<1x4x16xf32> to vector<4x16xf32>
      %c4 = arith.constant 4 : index
      %c0_16 = arith.constant 0 : index
      %42 = vector.load %arg4[%c4, %c0_16] : memref<8x6xf32, #tpu.memory_space<vmem>>, vector<4x3xf32>
      %43 = vector.extract_strided_slice %42 {offsets = [0, 0], sizes = [4, 1], strides = [1, 1]} : vector<4x3xf32> to vector<4x1xf32>
      %44 = vector.extract_strided_slice %41 {offsets = [0, 0], sizes = [4, 14], strides = [1, 1]} : vector<4x16xf32> to vector<4x14xf32>
      %45 = vector.broadcast %43 : vector<4x1xf32> to vector<4x14xf32>
      %46 = arith.mulf %45, %44 : vector<4x14xf32>
      %47 = vector.extract_strided_slice %42 {offsets = [0, 1], sizes = [4, 1], strides = [1, 1]} : vector<4x3xf32> to vector<4x1xf32>
      %48 = vector.extract_strided_slice %41 {offsets = [0, 1], sizes = [4, 14], strides = [1, 1]} : vector<4x16xf32> to vector<4x14xf32>
      %49 = vector.broadcast %47 : vector<4x1xf32> to vector<4x14xf32>
      %50 = arith.mulf %49, %48 : vector<4x14xf32>
      %51 = arith.addf %46, %50 : vector<4x14xf32>
      %52 = vector.extract_strided_slice %42 {offsets = [0, 2], sizes = [4, 1], strides = [1, 1]} : vector<4x3xf32> to vector<4x1xf32>
      %53 = vector.extract_strided_slice %41 {offsets = [0, 2], sizes = [4, 14], strides = [1, 1]} : vector<4x16xf32> to vector<4x14xf32>
      %54 = vector.broadcast %52 : vector<4x1xf32> to vector<4x14xf32>
      %55 = arith.mulf %54, %53 : vector<4x14xf32>
      %56 = arith.addf %51, %55 : vector<4x14xf32>
      %c4_17 = arith.constant 4 : index
      %c3_18 = arith.constant 3 : index
      %57 = vector.load %arg4[%c4_17, %c3_18] : memref<8x6xf32, #tpu.memory_space<vmem>>, vector<4x1xf32>
      %58 = vector.broadcast %57 : vector<4x1xf32> to vector<4x14xf32>
      %59 = arith.addf %56, %58 : vector<4x14xf32>
      %cst_19 = arith.constant dense<0.000000e+00> : vector<14xf32>
      %60 = vector.multi_reduction <add>, %59, %cst_19 [0] : vector<4x14xf32> to vector<14xf32>
      %61 = vector.shape_cast %60 : vector<14xf32> to vector<1x14xf32>
      %62 = arith.addf %35, %61 : vector<1x14xf32>
      %63 = arith.mulf %59, %59 : vector<4x14xf32>
      %cst_20 = arith.constant dense<0.000000e+00> : vector<14xf32>
      %64 = vector.multi_reduction <add>, %63, %cst_20 [0] : vector<4x14xf32> to vector<14xf32>
      %65 = vector.shape_cast %64 : vector<14xf32> to vector<1x14xf32>
      %66 = arith.addf %39, %65 : vector<1x14xf32>
      %c0_21 = arith.constant 0 : index
      %67 = memref.load %arg6[%c0_21] : memref<2xf32, #tpu.memory_space<smem>>
      %68 = vector.shape_cast %62 : vector<1x14xf32> to vector<1x1x14xf32>
      %cst_22 = arith.constant dense<0.000000e+00> : vector<1xf32>
      %69 = vector.multi_reduction <add>, %68, %cst_22 [1, 2] : vector<1x1x14xf32> to vector<1xf32>
      %70 = vector.shape_cast %69 : vector<1xf32> to vector<1x1x1xf32>
      %71 = vector.extract %70[0, 0, 0] : f32 from vector<1x1x1xf32>
      %72 = arith.addf %67, %71 : f32
      %c0_23 = arith.constant 0 : index
      %73 = memref.load %arg6[%c0_23] : memref<2xf32, #tpu.memory_space<smem>>
      memref.store %72, %arg6[%c0_23] : memref<2xf32, #tpu.memory_space<smem>>
      %c1 = arith.constant 1 : index
      %74 = memref.load %arg6[%c1] : memref<2xf32, #tpu.memory_space<smem>>
      %75 = vector.shape_cast %66 : vector<1x14xf32> to vector<1x1x14xf32>
      %cst_24 = arith.constant dense<0.000000e+00> : vector<1xf32>
      %76 = vector.multi_reduction <add>, %75, %cst_24 [1, 2] : vector<1x1x14xf32> to vector<1xf32>
      %77 = vector.shape_cast %76 : vector<1xf32> to vector<1x1x1xf32>
      %78 = vector.extract %77[0, 0, 0] : f32 from vector<1x1x1xf32>
      %79 = arith.addf %74, %78 : f32
      %c1_25 = arith.constant 1 : index
      %80 = memref.load %arg6[%c1_25] : memref<2xf32, #tpu.memory_space<smem>>
      memref.store %79, %arg6[%c1_25] : memref<2xf32, #tpu.memory_space<smem>>
    } else {
    }
    %c1_i32 = arith.constant 1 : i32
    %8 = arith.cmpi eq, %arg1, %c1_i32 : i32
    %9 = arith.extui %8 : i1 to i32
    %c0_i32_4 = arith.constant 0 : i32
    %10 = arith.cmpi ne, %9, %c0_i32_4 : i32
    scf.if %10 {
      %c0 = arith.constant 0 : index
      %11 = memref.load %arg6[%c0] : memref<2xf32, #tpu.memory_space<smem>>
      %cst = arith.constant 0.00892857183 : f32
      %12 = arith.mulf %11, %cst : f32
      %c1 = arith.constant 1 : index
      %13 = memref.load %arg6[%c1] : memref<2xf32, #tpu.memory_space<smem>>
      %cst_5 = arith.constant 0.00892857183 : f32
      %14 = arith.mulf %13, %cst_5 : f32
      %15 = arith.mulf %12, %12 : f32
      %16 = arith.subf %14, %15 : f32
      %cst_6 = arith.constant 0.000000e+00 : f32
      %17 = arith.maximumf %16, %cst_6 : f32
      %cst_7 = arith.constant 9.99999996E-13 : f32
      %18 = arith.addf %17, %cst_7 : f32
      %19 = math.rsqrt %18 : f32
      %c0_8 = arith.constant 0 : index
      %c0_9 = arith.constant 0 : index
      %c0_10 = arith.constant 0 : index
      %20 = vector.load %arg3[%c0_8, %c0_9, %c0_10] : memref<1x4x16xf32, #tpu.memory_space<vmem>>, vector<1x4x16xf32>
      %21 = vector.shape_cast %20 : vector<1x4x16xf32> to vector<4x16xf32>
      %c0_11 = arith.constant 0 : index
      %c0_12 = arith.constant 0 : index
      %22 = vector.load %arg4[%c0_11, %c0_12] : memref<8x6xf32, #tpu.memory_space<vmem>>, vector<4x3xf32>
      %23 = vector.extract_strided_slice %22 {offsets = [0, 0], sizes = [4, 1], strides = [1, 1]} : vector<4x3xf32> to vector<4x1xf32>
      %24 = vector.extract_strided_slice %21 {offsets = [0, 0], sizes = [4, 14], strides = [1, 1]} : vector<4x16xf32> to vector<4x14xf32>
      %25 = vector.broadcast %23 : vector<4x1xf32> to vector<4x14xf32>
      %26 = arith.mulf %25, %24 : vector<4x14xf32>
      %27 = vector.extract_strided_slice %22 {offsets = [0, 1], sizes = [4, 1], strides = [1, 1]} : vector<4x3xf32> to vector<4x1xf32>
      %28 = vector.extract_strided_slice %21 {offsets = [0, 1], sizes = [4, 14], strides = [1, 1]} : vector<4x16xf32> to vector<4x14xf32>
      %29 = vector.broadcast %27 : vector<4x1xf32> to vector<4x14xf32>
      %30 = arith.mulf %29, %28 : vector<4x14xf32>
      %31 = arith.addf %26, %30 : vector<4x14xf32>
      %32 = vector.extract_strided_slice %22 {offsets = [0, 2], sizes = [4, 1], strides = [1, 1]} : vector<4x3xf32> to vector<4x1xf32>
      %33 = vector.extract_strided_slice %21 {offsets = [0, 2], sizes = [4, 14], strides = [1, 1]} : vector<4x16xf32> to vector<4x14xf32>
      %34 = vector.broadcast %32 : vector<4x1xf32> to vector<4x14xf32>
      %35 = arith.mulf %34, %33 : vector<4x14xf32>
      %36 = arith.addf %31, %35 : vector<4x14xf32>
      %c0_13 = arith.constant 0 : index
      %c3 = arith.constant 3 : index
      %37 = vector.load %arg4[%c0_13, %c3] : memref<8x6xf32, #tpu.memory_space<vmem>>, vector<4x1xf32>
      %38 = vector.broadcast %37 : vector<4x1xf32> to vector<4x14xf32>
      %39 = arith.addf %36, %38 : vector<4x14xf32>
      %c0_14 = arith.constant 0 : index
      %c4 = arith.constant 4 : index
      %40 = vector.load %arg4[%c0_14, %c4] : memref<8x6xf32, #tpu.memory_space<vmem>>, vector<4x1xf32>
      %c0_15 = arith.constant 0 : index
      %c5 = arith.constant 5 : index
      %41 = vector.load %arg4[%c0_15, %c5] : memref<8x6xf32, #tpu.memory_space<vmem>>, vector<4x1xf32>
      %42 = vector.broadcast %19 : f32 to vector<4x1xf32>
      %43 = arith.mulf %40, %42 : vector<4x1xf32>
      %44 = vector.broadcast %43 : vector<4x1xf32> to vector<4x14xf32>
      %45 = arith.mulf %39, %44 : vector<4x14xf32>
      %46 = vector.broadcast %12 : f32 to vector<4x1xf32>
      %47 = arith.mulf %46, %43 : vector<4x1xf32>
      %48 = arith.subf %41, %47 : vector<4x1xf32>
      %49 = vector.broadcast %48 : vector<4x1xf32> to vector<4x14xf32>
      %50 = arith.addf %45, %49 : vector<4x14xf32>
      %c0_16 = arith.constant 0 : index
      %c0_17 = arith.constant 0 : index
      %c0_18 = arith.constant 0 : index
      %51 = vector.load %arg5[%c0_16, %c0_17, %c0_18] : memref<1x8x14xf32, #tpu.memory_space<vmem>>, vector<1x4x14xf32>
      %52 = vector.shape_cast %51 : vector<1x4x14xf32> to vector<4x14xf32>
      %53 = vector.shape_cast %50 : vector<4x14xf32> to vector<1x4x14xf32>
      tpu.vector_store %arg5[%c0_16, %c0_17, %c0_18], %53 {strides = array<i32>} : memref<1x8x14xf32, #tpu.memory_space<vmem>>, vector<1x4x14xf32>,
      %c0_19 = arith.constant 0 : index
      %c0_20 = arith.constant 0 : index
      %c0_21 = arith.constant 0 : index
      %54 = vector.load %arg3[%c0_19, %c0_20, %c0_21] : memref<1x4x16xf32, #tpu.memory_space<vmem>>, vector<1x4x16xf32>
      %55 = vector.shape_cast %54 : vector<1x4x16xf32> to vector<4x16xf32>
      %c4_22 = arith.constant 4 : index
      %c0_23 = arith.constant 0 : index
      %56 = vector.load %arg4[%c4_22, %c0_23] : memref<8x6xf32, #tpu.memory_space<vmem>>, vector<4x3xf32>
      %57 = vector.extract_strided_slice %56 {offsets = [0, 0], sizes = [4, 1], strides = [1, 1]} : vector<4x3xf32> to vector<4x1xf32>
      %58 = vector.extract_strided_slice %55 {offsets = [0, 0], sizes = [4, 14], strides = [1, 1]} : vector<4x16xf32> to vector<4x14xf32>
      %59 = vector.broadcast %57 : vector<4x1xf32> to vector<4x14xf32>
      %60 = arith.mulf %59, %58 : vector<4x14xf32>
      %61 = vector.extract_strided_slice %56 {offsets = [0, 1], sizes = [4, 1], strides = [1, 1]} : vector<4x3xf32> to vector<4x1xf32>
      %62 = vector.extract_strided_slice %55 {offsets = [0, 1], sizes = [4, 14], strides = [1, 1]} : vector<4x16xf32> to vector<4x14xf32>
      %63 = vector.broadcast %61 : vector<4x1xf32> to vector<4x14xf32>
      %64 = arith.mulf %63, %62 : vector<4x14xf32>
      %65 = arith.addf %60, %64 : vector<4x14xf32>
      %66 = vector.extract_strided_slice %56 {offsets = [0, 2], sizes = [4, 1], strides = [1, 1]} : vector<4x3xf32> to vector<4x1xf32>
      %67 = vector.extract_strided_slice %55 {offsets = [0, 2], sizes = [4, 14], strides = [1, 1]} : vector<4x16xf32> to vector<4x14xf32>
      %68 = vector.broadcast %66 : vector<4x1xf32> to vector<4x14xf32>
      %69 = arith.mulf %68, %67 : vector<4x14xf32>
      %70 = arith.addf %65, %69 : vector<4x14xf32>
      %c4_24 = arith.constant 4 : index
      %c3_25 = arith.constant 3 : index
      %71 = vector.load %arg4[%c4_24, %c3_25] : memref<8x6xf32, #tpu.memory_space<vmem>>, vector<4x1xf32>
      %72 = vector.broadcast %71 : vector<4x1xf32> to vector<4x14xf32>
      %73 = arith.addf %70, %72 : vector<4x14xf32>
      %c4_26 = arith.constant 4 : index
      %c4_27 = arith.constant 4 : index
      %74 = vector.load %arg4[%c4_26, %c4_27] : memref<8x6xf32, #tpu.memory_space<vmem>>, vector<4x1xf32>
      %c4_28 = arith.constant 4 : index
      %c5_29 = arith.constant 5 : index
      %75 = vector.load %arg4[%c4_28, %c5_29] : memref<8x6xf32, #tpu.memory_space<vmem>>, vector<4x1xf32>
      %76 = vector.broadcast %19 : f32 to vector<4x1xf32>
      %77 = arith.mulf %74, %76 : vector<4x1xf32>
      %78 = vector.broadcast %77 : vector<4x1xf32> to vector<4x14xf32>
      %79 = arith.mulf %73, %78 : vector<4x14xf32>
      %80 = vector.broadcast %12 : f32 to vector<4x1xf32>
      %81 = arith.mulf %80, %77 : vector<4x1xf32>
      %82 = arith.subf %75, %81 : vector<4x1xf32>
      %83 = vector.broadcast %82 : vector<4x1xf32> to vector<4x14xf32>
      %84 = arith.addf %79, %83 : vector<4x14xf32>
      %c0_30 = arith.constant 0 : index
      %c4_31 = arith.constant 4 : index
      %c0_32 = arith.constant 0 : index
      %85 = vector.load %arg5[%c0_30, %c4_31, %c0_32] : memref<1x8x14xf32, #tpu.memory_space<vmem>>, vector<1x4x14xf32>
      %86 = vector.shape_cast %85 : vector<1x4x14xf32> to vector<4x14xf32>
      %87 = vector.shape_cast %84 : vector<4x14xf32> to vector<1x4x14xf32>
      tpu.vector_store %arg5[%c0_30, %c4_31, %c0_32], %87 {strides = array<i32>} : memref<1x8x14xf32, #tpu.memory_space<vmem>>, vector<1x4x14xf32>,
    } else {
    }
    return
  }
  func.func @transform_0(%arg0: i32, %arg1: i32, %arg2: i32) -> (i32, i32, i32) {
    %c0_i32 = arith.constant 0 : i32
    %c0_i32_0 = arith.constant 0 : i32
    %c0_i32_1 = arith.constant 0 : i32
    return %arg0, %c0_i32, %c0_i32_0 : i32, i32, i32
  }
  func.func @transform_1(%arg0: i32, %arg1: i32, %arg2: i32) -> (i32, i32) {
    %c0_i32 = arith.constant 0 : i32
    %c0_i32_0 = arith.constant 0 : i32
    %c0_i32_1 = arith.constant 0 : i32
    return %c0_i32, %c0_i32_0 : i32, i32
  }
  func.func @transform_2(%arg0: i32, %arg1: i32, %arg2: i32) -> (i32, i32, i32) {
    %c1_i32 = arith.constant 1 : i32
    %0 = arith.cmpi eq, %arg1, %c1_i32 : i32
    %c0_i32 = arith.constant 0 : i32
    %1 = arith.select %0, %arg2, %c0_i32 : i32
    %c0_i32_0 = arith.constant 0 : i32
    %c0_i32_1 = arith.constant 0 : i32
    return %arg0, %c0_i32_0, %1 : i32, i32, i32
  }
}

</mosaic_0001>

<bundles_post_ra>
// kernel: tpu_custom_call.1
= control target key start
LH: loop header
LB: loop body
LE: loop exit
PB: predicated region body
PF: predicated region fallthrough
CT: control target
= control target key end

     0   :  { %7 = vsyncpa [#allocation4], 0  ;;  %s1166_s0 = inlined_call_operand.hbm [shape: f32[2,4,16], index: 0, kind: input, shape index: {}]   ;;  %s1167_s1 = inlined_call_operand.hbm [shape: f32[8,6], index: 1, kind: input, shape index: {}]   ;;  %s1168_s2 = inlined_call_operand.hbm [shape: f32[2,8,14], index: 2, kind: output, shape index: {}]  }
   0x1   :  { %9 = vsyncpa [#allocation4 + $0x1], 0 }
   0x2   :  { %10 = vsyncpa [#allocation7], 0 }
   0x3   :  { %11 = vsyncpa [#allocation5], 0 }
   0x4   :  { %13 = vsyncpa [#allocation5 + $0x1], 0  ;;  %s926_s9 = smov 0   ;;  %s928_s10 = smov 0  }
   0x5   :  { %s930_s11 = smov 0   ;;  %s932_s12 = smov 0  }
   0x6   :  { %s934_s13 = smov 0   ;;  %s936_s14 = smov 0  }
   0x7   :  { %s938_s15 = smov 0   ;;  %s940_s16 = smov 0  }
   0x8 LB: > { %s577_s17 = sadd.s32 4294967295, %s889_s16   ;;  %s578_s18 = sadd.s32 4294967294, %s889_s16   ;;  %s889_s16 = sphi %s940_s16, %s19_s16   ;;  %s885_s15 = sphi %s938_s15, %s1192_s15   ;;  %s881_s14 = sphi %s936_s14, %s1191_s14   ;;  %s877_s13 = sphi %s934_s13, %s1190_s13   ;;  %s873_s12 = sphi %s932_s12, %s1189_s12   ;;  %s869_s11 = sphi %s930_s11, %s1188_s11   ;;  %s865_s10 = sphi %s928_s10, %s1187_s10   ;;  %s861_s9 = sphi %s926_s9, %s1186_s9  }
   0x9   : > { %p58_p0 = scmp.ne.s32.totalorder %s865_s10, %s861_s9  ;;  %p970_p1 = scmp.eq.s32.totalorder %s577_s17, 0 }
   0xa   : > { %p974_p2 = scmp.eq.s32.totalorder %s577_s17, 3  ;;  %p115_p3 = scmp.eq.s32.totalorder %s578_s18, 3 }
   0xb   : > { %s1173_s19 = scalar_select %p970_p1, 1, 0 }
   0xc   : > { %s1174_s20 = scalar_select %p974_p2, 1, 0 }
   0xd   : > { %p980_p4 = por %p970_p1, %p58_p0  ;;  %p579_p5 = scmp.ge.s32.totalorder %s889_s16, 1 }
   0xe   : > { %p985_p6 = por %p115_p3, %p58_p0  ;;  %p122_p7 = scmp.lt.s32.totalorder %s889_s16, 5 }
   0xf   : > { %s1175_s21 = scalar_select %p980_p4, 1, 0 }
  0x10   : > { %s1176_s22 = scalar_select %p985_p6, 1, 0 }
  0x11   : > { %p990_p8 = pnand %p579_p5, %p122_p7  ;;  %s891_s24 = smov [#allocation6]  }
  0x12   : > { %s135_s25 = sshll.u32 %s891_s24, 4  ;;  %s34_s27 = sadd.s32 1, %s881_s14  ;;  %s136_s25 = int_to_ptr.vmem [resolvable:$true] %s135_s25 }
  0x13   : > { %s1177_s23 = scalar_select %p990_p8, 1, 0 }
  0x14   : > { %p614_p9 = pneg %p990_p8  ;;  %s729_s30 = scalar_lea.hbm %s1167_s1, 128 }
  0x15   : > { %p730_p11 = scmp.ne.s32.totalorder %s1167_s1, %s729_s30  ;;  %p736_p3 = scmp.lt.u32.totalorder %s729_s30, %s1167_s1 }
  0x16   : > { %p998_p10 = pnand %p614_p9, %p970_p1 }
  0x18   : > { %p731_p12 = pneg %p998_p10 }
  0x1a   : > { %p732_p13 = pnand %p731_p12, %p730_p11 }
  0x1c   : > { %p733_p0 = pneg %p732_p13 }
  0x1e   : > { %p738_p5 = pnand %p736_p3, %p733_p0 }
  0x20   : > { %741 = shalt.err (!%p738_p5)
}
  0x21   : > { %s742_s7 = scalar_lea.vmem %s136_s25, 128  ;;  %p750_p1 = scmp.lt.s32.totalorder %s136_s25, %s136_s25 }
  0x22   : > { %p743_p7 = scmp.ne.s32.totalorder %s136_s25, %s742_s7  ;;  %p751_p4 = scmp.lt.s32.totalorder %s742_s7, %s742_s7 }
  0x24   : > { %p745_p9 = pnand %p743_p7, %p731_p12  ;;  %p752_p8 = por %p751_p4, %p750_p1 }
  0x26   : > { %p746_p6 = pneg %p745_p9 }
  0x28   : > { %p753_p2 = pnand %p752_p8, %p746_p6 }
  0x2a   : > { %756 = shalt.err (!%p753_p2)
}
  0x2b   : > { %617 = dma.hbm_to_vmem [thread:$0]  (!%p998_p10), %s1167_s1, 128, %s136_s25, [#allocation7]  }
  0x2c   : > { %p36_p11 = scmp.ge.s32.totalorder %s34_s27, 2  ;;  %s38_s18 = sadd.s32 1, %s885_s15 }
  0x2d   : > { %s45_s24 = sadd.s32 1, %s869_s11  ;;  %p52_p1 = scmp.ne.s32.totalorder %s869_s11, %s865_s10 }
  0x2e   : > { %s1194_s27 = smov (%p36_p11, %s34_s27), 0  ;;  %s1196_s18 = smov (!%p36_p11, %s38_s18), %s885_s15 }
  0x2f   : > { %p53_p2 = scmp.eq.s32.totalorder %s889_s16, 0  ;;  %p1179_p4 = scmp.ne.s32.totalorder %s1174_s20, 0 }
  0x30   : > { %p40_p8 = scmp.ge.s32.totalorder %s1196_s18, 2  ;;  %p627_p12 = scmp.lt.s32.totalorder %s889_s16, 4 }
  0x31   : > { %p1029_p6 = por %p1179_p4, %p52_p1  ;;  %p54_p13 = por %p53_p2, %p52_p1 }
  0x32   : > { %s146_s25 = sand.u32 1, %s869_s11   ;;  %s1198_s18 = smov (%p40_p8, %s1196_s18), 0 }
  0x33   : > { %s582_s28 = sshll.u32 %s146_s25, 2  ;;  %s42_s29 = ssub.s32 %s885_s15, %s1198_s18 }
  0x34   : > { %p43_p10 = scmp.eq.s32.totalorder %s42_s29, 0  ;;  %s583_s30 = sshll.u32 %s885_s15, 6 }
  0x35   : > { %s1043_s20 = scalar_lea.hbm %s1166_s0, %s583_s30  ;;  %s150_s5 = scalar_lea.vmem [#allocation3], %s582_s28 }
  0x36   : > { %s157_s6 = sshll.u32 %s150_s5, 4  ;;  %p1052_p0 = pnand %p627_p12, %p54_p13  ;;  %s1048_s6 = int_to_ptr.vmem [resolvable:$true] %s157_s6 }
  0x37   : > { %s1046_s7 = scalar_select %p43_p10, %s869_s11, %s45_s24  }
  0x38   : > { %s147_s17 = scalar_lea.sflag [#allocation4], %s146_s25  ;;  %s757_s29 = scalar_lea.hbm %s1043_s20, 64 }
  0x39   : > { %p758_p3 = scmp.ne.s32.totalorder %s1043_s20, %s757_s29  ;;  %p759_p5 = pneg %p1052_p0 }
  0x3a   : > { %s762_s30 = scalar_lea.hbm %s1166_s0, 128  ;;  %p763_p11 = scmp.lt.u32.totalorder %s1043_s20, %s1166_s0 }
  0x3b   : > { %p760_p7 = pnand %p759_p5, %p758_p3  ;;  %p764_p1 = scmp.lt.u32.totalorder %s762_s30, %s757_s29 }
  0x3c   : > { %p766_p4 = scmp.lt.u32.totalorder %s757_s29, %s1043_s20 }
  0x3d   : > { %p761_p9 = pneg %p760_p7  ;;  %p765_p2 = por %p764_p1, %p763_p11 }
  0x3f   : > { %p767_p8 = por %p766_p4, %p765_p2 }
  0x41   : > { %p768_p12 = pnand %p767_p8, %p761_p9 }
  0x43   : > { %771 = shalt.err (!%p768_p12)
}
  0x44   : > { %s772_s25 = scalar_lea.vmem %s1048_s6, 64  ;;  %s892_s5 = smov [#allocation3]  }
  0x45   : > { %p773_p13 = scmp.ne.s32.totalorder %s1048_s6, %s772_s25  ;;  %s777_s24 = sshll.u32 %s892_s5, 4  ;;  %s778_s24 = int_to_ptr.vmem [resolvable:$false] %s777_s24 }
  0x46   : > { %s779_s28 = scalar_lea.vmem %s778_s24, 128  ;;  %p780_p7 = scmp.lt.s32.totalorder %s1048_s6, %s778_s24 }
  0x47   : > { %p775_p10 = pnand %p773_p13, %p759_p5  ;;  %p781_p11 = scmp.lt.s32.totalorder %s779_s28, %s772_s25 }
  0x49   : > { %p776_p3 = pneg %p775_p10  ;;  %p782_p1 = por %p781_p11, %p780_p7 }
  0x4b   : > { %p783_p2 = pnand %p782_p1, %p776_p3 }
  0x4d   : > { %786 = shalt.err (!%p783_p2)
}
  0x4e   : > { %621 = dma.hbm_to_vmem [thread:$0]  (!%p1052_p0), %s1043_s20, 64, %s1048_s6, %s147_s17  }
  0x4f   : > { %p1182_p9 = scmp.ne.s32.totalorder %s1177_s23, 0 }
  0x50   : > { %s1084_s29 = sand.u32 (!%p1182_p9), 1, %s865_s10   ;;  %p1183_p5 = scmp.ne.s32.totalorder (!%p1182_p9), %s1175_s21, 0 }
  0x51   : > { %166 = sbr.rel (%p1182_p9) target bundleno = 945 (0x3b1), region = 28  ;;  %s585_s30 = sshll.u32 (!%p1182_p9), %s1084_s29, 2 }
  0x52   : > { %s169_s3 = scalar_lea.sflag (!%p1182_p9), [#allocation4], %s1084_s29  ;;  %s1088_s4 = scalar_lea.vmem (!%p1182_p9), [#allocation3], %s585_s30 }
  0x58   : > { %848 = dma.done.wait (%p1183_p5), %s169_s3, 64  }
  0x59   : > { %850 = vsyncadd (%p1183_p5), %s169_s3, 4294967232  ;;  %p1184_p0 = scmp.ne.s32.totalorder %s1173_s19, 0 }
  0x5b   : > { %852 = dma.done.wait (%p1184_p0), [#allocation7], 128  }
  0x5c   : > { %854 = vsyncadd (%p1184_p0), [#allocation7], 4294967168  ;;  %p199_p4 = scmp.eq.s32.totalorder %s873_s12, 0  ;;  %s587_s23 = sshll.u32 %s1084_s29, 3 }
  0x5d   : > { %s893_s20 = smov 0.0   ;;  %s1100_s6 = scalar_lea.vmem [#allocation8], %s587_s23 }
  0x5e   : > { %610 = sst [smem:[#allocation2]] (%p199_p4), %s893_s20  ;;  %p589_p8 = scmp.ne.s32.totalorder %s873_s12, 0 }
  0x5f   : > { %611 = sst [smem:[#allocation2 + $0x1]] (%p199_p4), %s893_s20  ;;  %v213_v0 = vld [vmem:[#allocation6] sm:$0xf] (!%p589_p8)  ;;  %v894_v1 = vmov (!%p589_p8), 2   ;;  %v895_v2 = vmov (!%p589_p8), 1   ;;  %v896_v4 = vmov (!%p589_p8), 0  }
  0x60   : > { %211 = sbr.rel (%p589_p8) target bundleno = 580 (0x244), region = 44  ;;  %713 = vset.pattern.permute.xlu1 (!%p589_p8), %v894_v1  ;;  %712 = vset.pattern.permute.xlu0 (!%p589_p8), %v895_v2  ;;  %v263_v3 = vld [vmem:[#allocation6 + $0x4] sm:$0xf] (!%p589_p8)  ;;  %v897_v5 = vmov (!%p589_p8), 3   ;;  %v212_v6 = vld [vmem:[%s1088_s4] sm:$0xf] (!%p589_p8) }
  0x61   : > { %231 = vperm.xlu1 (!%p589_p8), %713, %v213_v0   ;;  %221 = vperm.xlu0 (!%p589_p8), %712, %v213_v0   ;;  %s898_s19 = smov (!%p589_p8), 127   ;;  %s899_s21 = smov (!%p589_p8), 126   ;;  %vm245_vm0 = vcmask (!%p589_p8), 109568   ;;  %vm313_vm1 = vcmask (!%p589_p8), 106496  }
  0x62   : > { %s312_s8 = sld [smem:[#allocation2]] (!%p589_p8)  ;;  %s590_s17 = sld [smem:[#allocation2 + $0x1]] (!%p589_p8) }
  0x65   : > { %281 = vperm.xlu1 (!%p589_p8), %713, %v263_v3   ;;  %271 = vperm.xlu0 (!%p589_p8), %712, %v263_v3  }
  0x69   : > { %715 = vset.pattern.permute.xlu1 %v896_v4  ;;  %714 = vset.pattern.permute.xlu0 %v896_v4 }
  0x6a   : > { %266 = vperm.xlu1 %715, %v263_v3   ;;  %216 = vperm.xlu0 %714, %v213_v0  }
  0x6e   : > { %716 = vset.pattern.permute.xlu1 %v897_v5  ;;  %717 = vset.pattern.permute.xlu0 %v897_v5 }
  0x6f   : > { %241 = vperm.xlu1 %716, %v213_v0   ;;  %291 = vperm.xlu0 %717, %v263_v3  }
  0xe0   : > { %v232_v7 = vpop.permute.xlu1 %231  ;;  %v222_v8 = vpop.permute.xlu0 %221 }
  0xe1   : > { %v234_v9 = vmul.f32 %v232_v7, %v212_v6  ;;  %v224_v10 = vmul.f32 %v222_v8, %v212_v6 }
  0xe3   : > { %226 = vrot.lane.b32.xlu1 %v224_v10, %s898_s19  ;;  %236 = vrot.lane.b32.xlu0 %v234_v9, %s899_s21 }
  0xe4   : > { %v272_v11 = vpop.permute.xlu0 %271  ;;  %v282_v13 = vpop.permute.xlu1 %281 }
  0xe5   : > { %v274_v12 = vmul.f32 %v272_v11, %v212_v6  ;;  %v284_v14 = vmul.f32 %v282_v13, %v212_v6 }
  0xe7   : > { %276 = vrot.lane.b32.xlu1 %v274_v12, %s898_s19 }
  0xe9   : > { %v267_v15 = vpop.permute.xlu1 %266  ;;  %v217_v16 = vpop.permute.xlu0 %216 }
  0xea   : > { %v219_v19 = vmul.f32 %v217_v16, %v212_v6  ;;  %v269_v25 = vmul.f32 %v267_v15, %v212_v6 }
  0xeb   : > { %286 = vrot.lane.b32.xlu1 %v284_v14, %s899_s21 }
  0xee   : > { %v242_v17 = vpop.permute.xlu1 %241  ;;  %v292_v18 = vpop.permute.xlu0 %291 }
 0x155   : > { %v227_v20 = vpop.permute.xlu1 %226  ;;  %v237_v21 = vpop.permute.xlu0 %236 }
 0x156   : > { %v229_v22 = vadd.f32 %v227_v20, %v219_v19 }
 0x158   : > { %v239_v23 = vadd.f32 %v237_v21, %v229_v22 }
 0x159   : > { %v277_v24 = vpop.permute.xlu1 %276 }
 0x15a   : > { %v244_v26 = vadd.f32 %v242_v17, %v239_v23  ;;  %v279_v29 = vadd.f32 %v277_v24, %v269_v25 }
 0x15c   : > { %v246_v27 = vsel %vm245_vm0, %v244_v26, 0.0  ;;  %v254_v28 = vmul.f32 %v244_v26, %v244_v26 }
 0x15d   : > { %v247_v30 = vrot.slane %v246_v27, 4  ;;  %v287_v31 = vpop.permute.xlu1 %286 }
 0x15e   : > { %v255_v32 = vsel %vm245_vm0, %v254_v28, 0.0  ;;  %v289_v33 = vadd.f32 %v287_v31, %v279_v29 }
 0x15f   : > { %v248_v34 = vadd.f32 %v247_v30, %v246_v27  ;;  %v256_v35 = vrot.slane %v255_v32, 4 }
 0x160   : > { %v294_v36 = vadd.f32 %v292_v18, %v289_v33 }
 0x161   : > { %v249_v37 = vrot.slane %v248_v34, 2  ;;  %v257_v38 = vadd.f32 %v256_v35, %v255_v32 }
 0x162   : > { %v295_v39 = vsel %vm245_vm0, %v294_v36, 0.0  ;;  %v303_v40 = vmul.f32 %v294_v36, %v294_v36 }
 0x163   : > { %v296_v41 = vrot.slane %v295_v39, 4  ;;  %v258_v42 = vrot.slane %v257_v38, 2  ;;  %v250_v46 = vadd.f32 %v249_v37, %v248_v34 }
 0x164   : > { %v304_v43 = vsel %vm245_vm0, %v303_v40, 0.0 }
 0x165   : > { %v297_v44 = vadd.f32 %v296_v41, %v295_v39  ;;  %v305_v45 = vrot.slane %v304_v43, 4  ;;  %v259_v49 = vadd.f32 %v258_v42, %v257_v38  ;;  %v251_v50 = vrot.slane %v250_v46, 1 }
 0x167   : > { %v298_v47 = vrot.slane %v297_v44, 2  ;;  %v306_v48 = vadd.f32 %v305_v45, %v304_v43  ;;  %v260_v54 = vrot.slane %v259_v49, 1  ;;  %v252_v56 = vadd.f32 %v251_v50, %v250_v46 }
 0x169   : > { %v299_v51 = vadd.f32 %v298_v47, %v297_v44  ;;  %v307_v52 = vrot.slane %v306_v48, 2  ;;  %v261_v60 = vadd.f32 %v260_v54, %v259_v49 }
 0x16b   : > { %v300_v53 = vrot.slane %v299_v51, 1  ;;  %v308_v55 = vadd.f32 %v307_v52, %v306_v48 }
 0x16d   : > { %v301_v57 = vadd.f32 %v300_v53, %v299_v51  ;;  %v309_v58 = vrot.slane %v308_v55, 1 }
 0x16f   : > { %v302_v59 = vadd.f32 %v301_v57, %v252_v56  ;;  %v310_v61 = vadd.f32 %v309_v58, %v308_v55 }
 0x171   : > { %v314_v62 = vsel %vm313_vm1, %v302_v59, 0.0  ;;  %v311_v63 = vadd.f32 %v310_v61, %v261_v60 }
 0x172   : > { %315 = vadd.xlane.f32.xlu0 %v314_v62 }
 0x173   : > { %v328_v0 = vsel %vm313_vm1, %v311_v63, 0.0 }
 0x174   : > { %329 = vadd.xlane.f32.xlu1 %v328_v0 }
 0x1ff   : > { %v316_v1 = vpop.xlane.xlu0 %315 }
 0x200   : > { %v317_v2 = vrot.slane %v316_v1, 4 }
 0x201   : > { %v330_v3 = vpop.xlane.xlu1 %329 }
 0x202   : > { %v318_v4 = vadd.f32 %v317_v2, %v316_v1  ;;  %v331_v5 = vrot.slane %v330_v3, 4 }
 0x204   : > { %v319_v6 = vrot.slane %v318_v4, 2  ;;  %v332_v7 = vadd.f32 %v331_v5, %v330_v3 }
 0x206   : > { %v333_v8 = vrot.slane %v332_v7, 2  ;;  %v320_v9 = vadd.f32 %v319_v6, %v318_v4 }
 0x208   : > { %v334_v10 = vadd.f32 %v333_v8, %v332_v7  ;;  %v321_v11 = vrot.slane %v320_v9, 1 }
 0x20a   : > { %v322_v12 = vadd.f32 %v321_v11, %v320_v9  ;;  %v335_v13 = vrot.slane %v334_v10, 1 }
 0x20c   : > { %598 = vpush %v322_v12  ;;  %v336_v14 = vadd.f32 %v335_v13, %v334_v10 }
 0x20e   : > { %600 = vpush %v336_v14 }
 0x23d   : > { %s599_s25 = spop %598 }
 0x23e   : > { %s324_s5 = sadd.f32 %s599_s25, %s312_s8 }
 0x23f   : > { %s601_s24 = spop %600 }
 0x240   : > { %326 = sst [smem:[#allocation2]] %s324_s5 }
 0x241   : > { %s338_s28 = sadd.f32 %s601_s24, %s590_s17 }
 0x243   : > { %340 = sst [smem:[#allocation2 + $0x1]] %s338_s28 }
 0x244 PF: > { %p591_p12 = scmp.ne.s32.totalorder %s873_s12, 1 }
 0x245   : > { %s345_s30 = sld [smem:[#allocation2]] (!%p591_p12)  ;;  %s592_s3 = sld [smem:[#allocation2 + $0x1]] (!%p591_p12)  ;;  %v900_v15 = vmov (!%p591_p12), 2   ;;  %v901_v16 = vmov (!%p591_p12), 1   ;;  %v357_v17 = vld [vmem:[#allocation6] sm:$0xf] (!%p591_p12) }
 0x246   : > { %344 = sbr.rel (%p591_p12) target bundleno = 921 (0x399), region = 48  ;;  %719 = vset.pattern.permute.xlu1 (!%p591_p12), %v900_v15  ;;  %718 = vset.pattern.permute.xlu0 (!%p591_p12), %v901_v16  ;;  %v413_v18 = vld [vmem:[#allocation6 + $0x4] sm:$0xf] (!%p591_p12)  ;;  %v902_v19 = vmov (!%p591_p12), 0   ;;  %s903_s12 = smov (!%p591_p12), 0.0   ;;  %v905_v28 = vmov (!%p591_p12), 3  }
 0x247   : > { %375 = vperm.xlu1 (!%p591_p12), %719, %v357_v17   ;;  %365 = vperm.xlu0 (!%p591_p12), %718, %v357_v17   ;;  %s904_s5 = smov (!%p591_p12), 1   ;;  %v906_v29 = vmov (!%p591_p12), 4   ;;  %v907_v30 = vmov (!%p591_p12), 5   ;;  %v356_v31 = vld [vmem:[%s1088_s4] sm:$0xf] (!%p591_p12)  ;;  %s908_s24 = smov (!%p591_p12), 127  }
 0x248   : > { %v412_v34 = vld [vmem:[%s1088_s4] sm:$0xf] (!%p591_p12)  ;;  %s909_s28 = smov (!%p591_p12), 126   ;;  %vm410_vm2 = vcmask (!%p591_p12), 109568  }
 0x24b   : > { %s346_s23 = smul.f32 (!%p591_p12), 0.008928572, %s345_s30  ;;  %431 = vperm.xlu1 (!%p591_p12), %719, %v413_v18   ;;  %421 = vperm.xlu0 (!%p591_p12), %718, %v413_v18  }
 0x24c   : > { %s348_s20 = smul.f32 (!%p591_p12), 0.008928572, %s592_s3 }
 0x24d   : > { %s349_s19 = smul.f32 %s346_s23, %s346_s23  ;;  %v397_v23 = vstv %s346_s23 }
 0x24f   : > { %s350_s21 = ssub.f32 %s348_s20, %s349_s19  ;;  %721 = vset.pattern.permute.xlu1 %v902_v19  ;;  %720 = vset.pattern.permute.xlu0 %v902_v19 }
 0x251   : > { %s351_s8 = smax.f32 %s903_s12, %s350_s21 }
 0x252   : > { %s352_s17 = sadd.f32 1e-12, %s351_s8 }
 0x254   : > { %v353_v20 = vstv %s352_s17 }
 0x255   : > { %727 = vrsqrt.f32 %v353_v20 }
 0x25f   : > { %v728_v21 = vpop.eup %727 }
 0x260   : > { %602 = vpush %v728_v21 }
 0x291   : > { %s603_s25 = spop %602 }
 0x292   : > { %v389_v22 = vstv %s603_s25 }
 0x293   : > { %v390_v24 = vmul.f32 %v389_v22, %v357_v17  ;;  %v445_v25 = vmul.f32 %v413_v18, %v389_v22 }
 0x295   : > { %v398_v26 = vmul.f32 %v397_v23, %v390_v24  ;;  %v452_v27 = vmul.f32 %v445_v25, %v397_v23 }
 0x297   : > { %454 = vrot.lane.b32.xlu1 %v452_v27, %s904_s5  ;;  %400 = vrot.lane.b32.xlu0 %v398_v26, %s904_s5 }
 0x29b   : > { %416 = vperm.xlu1 %721, %v413_v18   ;;  %360 = vperm.xlu0 %720, %v357_v17  }
 0x29f   : > { %722 = vset.pattern.permute.xlu1 %v905_v28  ;;  %723 = vset.pattern.permute.xlu0 %v905_v28 }
 0x2a0   : > { %385 = vperm.xlu1 %722, %v357_v17   ;;  %441 = vperm.xlu0 %723, %v413_v18  }
 0x2a4   : > { %724 = vset.pattern.permute.xlu1 %v906_v29  ;;  %725 = vset.pattern.permute.xlu0 %v907_v30 }
 0x2a5   : > { %393 = vperm.xlu1 %724, %v390_v24  }
 0x2a9   : > { %448 = vperm.xlu1 %724, %v445_v25  }
 0x2ad   : > { %726 = vset.pattern.permute.xlu1 %v907_v30 }
 0x2c6   : > { %v366_v32 = vpop.permute.xlu0 %365  ;;  %v376_v37 = vpop.permute.xlu1 %375 }
 0x2c7   : > { %v368_v33 = vmul.f32 %v366_v32, %v356_v31  ;;  %v378_v43 = vmul.f32 %v376_v37, %v356_v31 }
 0x2c9   : > { %370 = vrot.lane.b32.xlu0 %v368_v33, %s908_s24 }
 0x2ca   : > { %v422_v35 = vpop.permute.xlu0 %421  ;;  %v432_v38 = vpop.permute.xlu1 %431 }
 0x2cb   : > { %v424_v36 = vmul.f32 %v422_v35, %v412_v34  ;;  %v434_v44 = vmul.f32 %v432_v38, %v412_v34 }
 0x2cd   : > { %426 = vrot.lane.b32.xlu1 %v424_v36, %s908_s24 }
 0x309   : > { %v455_v39 = vpop.permute.xlu1 %454  ;;  %v401_v40 = vpop.permute.xlu0 %400 }
 0x30a   : > { %v457_v41 = vsub.f32 %v413_v18, %v455_v39  ;;  %v403_v42 = vsub.f32 %v357_v17, %v401_v40 }
 0x30c   : > { %460 = vperm.xlu1 %726, %v457_v41   ;;  %406 = vperm.xlu0 %725, %v403_v42  }
 0x310   : > { %380 = vrot.lane.b32.xlu1 %v378_v43, %s909_s28  ;;  %436 = vrot.lane.b32.xlu0 %v434_v44, %s909_s28 }
 0x31a   : > { %v417_v45 = vpop.permute.xlu1 %416  ;;  %v361_v47 = vpop.permute.xlu0 %360 }
 0x31b   : > { %v419_v53 = vmul.f32 %v417_v45, %v412_v34  ;;  %v363_v54 = vmul.f32 %v361_v47, %v356_v31 }
 0x31f   : > { %v386_v46 = vpop.permute.xlu1 %385  ;;  %v442_v49 = vpop.permute.xlu0 %441 }
 0x324   : > { %v394_v48 = vpop.permute.xlu1 %393 }
 0x328   : > { %v449_v50 = vpop.permute.xlu1 %448 }
 0x33b   : > { %v371_v52 = vpop.permute.xlu0 %370 }
 0x33c   : > { %v373_v58 = vadd.f32 %v371_v52, %v363_v54 }
 0x33f   : > { %v427_v51 = vpop.permute.xlu1 %426 }
 0x340   : > { %v429_v57 = vadd.f32 %v427_v51, %v419_v53 }
 0x38b   : > { %v461_v55 = vpop.permute.xlu1 %460  ;;  %v407_v56 = vpop.permute.xlu0 %406 }
 0x38f   : > { %v381_v59 = vpop.permute.xlu1 %380  ;;  %v437_v60 = vpop.permute.xlu0 %436 }
 0x390   : > { %v383_v61 = vadd.f32 %v381_v59, %v373_v58  ;;  %v439_v62 = vadd.f32 %v437_v60, %v429_v57 }
 0x392   : > { %v388_v63 = vadd.f32 %v386_v46, %v383_v61  ;;  %v444_v0 = vadd.f32 %v442_v49, %v439_v62 }
 0x394   : > { %v396_v1 = vmul.f32 %v394_v48, %v388_v63  ;;  %v451_v2 = vmul.f32 %v449_v50, %v444_v0 }
 0x396   : > { %v409_v3 = vadd.f32 %v407_v56, %v396_v1  ;;  %v463_v4 = vadd.f32 %v461_v55, %v451_v2 }
 0x398   : > { %411 = vst.msk [vmem:[%s1100_s6] sm:$0xf] %vm410_vm2, %v409_v3  ;;  %464 = vst.msk [vmem:[%s1100_s6 + $0x4] sm:$0xf] %vm410_vm2, %v463_v4 }
 0x399 PF: > { %s594_s4 = sshll.u32 %s877_s13, 7  ;;  %s482_s20 = sshll.u32 %s1100_s6, 4  ;;  %s483_s20 = int_to_ptr.vmem [resolvable:$true] %s482_s20 }
 0x39a   : > { %s1117_s23 = scalar_lea.hbm %s1168_s2, %s594_s4  ;;  %s466_s19 = scalar_lea.sflag [#allocation5], %s1084_s29 }
 0x39b   : > { %s787_s21 = scalar_lea.vmem %s483_s20, 128  ;;  %s910_s12 = smov [#allocation8]  }
 0x39c   : > { %p788_p13 = scmp.ne.s32.totalorder %s483_s20, %s787_s21  ;;  %s791_s8 = sshll.u32 %s910_s12, 4  ;;  %s792_s8 = int_to_ptr.vmem [resolvable:$false] %s791_s8 }
 0x39d   : > { %s793_s17 = scalar_lea.vmem %s792_s8, 256  ;;  %p794_p7 = scmp.lt.s32.totalorder %s483_s20, %s792_s8 }
 0x39e   : > { %p789_p10 = pnand %p788_p13, %p1029_p6  ;;  %p795_p11 = scmp.lt.s32.totalorder %s793_s17, %s787_s21 }
 0x3a0   : > { %p790_p3 = pneg %p789_p10  ;;  %p796_p1 = por %p795_p11, %p794_p7 }
 0x3a2   : > { %p797_p2 = pnand %p796_p1, %p790_p3 }
 0x3a4   : > { %800 = shalt.err (!%p797_p2)
}
 0x3a5   : > { %s801_s13 = scalar_lea.hbm %s1117_s23, 128  ;;  %s805_s25 = scalar_lea.hbm %s1168_s2, 256 }
 0x3a6   : > { %p802_p9 = scmp.ne.s32.totalorder %s1117_s23, %s801_s13  ;;  %p806_p4 = scmp.lt.u32.totalorder %s1117_s23, %s1168_s2 }
 0x3a7   : > { %p807_p8 = scmp.lt.u32.totalorder %s805_s25, %s801_s13  ;;  %p809_p13 = scmp.lt.u32.totalorder %s801_s13, %s1117_s23 }
 0x3a8   : > { %p803_p5 = pnand %p802_p9, %p1029_p6 }
 0x3a9   : > { %p808_p12 = por %p807_p8, %p806_p4 }
 0x3aa   : > { %p804_p0 = pneg %p803_p5 }
 0x3ab   : > { %p810_p10 = por %p809_p13, %p808_p12 }
 0x3ad   : > { %p811_p3 = pnand %p810_p10, %p804_p0 }
 0x3af   : > { %814 = shalt.err (!%p811_p3)
}
 0x3b0   : > { %612 = dma.vmem_to_hbm [thread:$0]  (%p1029_p6), %s483_s20, 128, %s1117_s23, %s466_s19  }
 0x3b1 PF: > { %p629_p7 = scmp.ge.s32.totalorder %s889_s16, 2  ;;  %s494_s28 = sand.u32 1, %s861_s9  }
 0x3b2   : > { %p1185_p11 = scmp.ne.s32.totalorder %s1176_s22, 0  ;;  %s495_s4 = scalar_lea.sflag [#allocation5], %s494_s28 }
 0x3b4   : > { %p623_p1 = pnand %p629_p7, %p1185_p11 }
 0x3b6   : > { %856 = dma.done.wait (!%p623_p1), %s495_s4, 128  }
 0x3b7   : > { %858 = vsyncadd (!%p623_p1), %s495_s4, 4294967168  ;;  %s19_s16 = sadd.s32 1, %s889_s16   ;;  %s1186_s9 = smov %s865_s10 }
 0x3b8   : > { %p16_p2 = scmp.ge.s32.totalorder %s19_s16, 6   ;;  %s1187_s10 = smov %s869_s11 }
 0x3b9   : > { %s1188_s11 = smov %s1046_s7  ;;  %s1189_s12 = smov %s881_s14 }
 0x3ba   : > { %s1190_s13 = smov %s885_s15  ;;  %s1191_s14 = smov %s1194_s27 }
 0x3bb   : > { %s1192_s15 = smov %s1198_s18  ;;  %18 = sbr.rel (!%p16_p2) target bundleno = 8 (0x8), region = 93 }
 0x3c2   :  { %500 = vsyncpa [#allocation4], 1 }
 0x3c3   :  { %502 = vsyncpa [#allocation4 + $0x1], 1 }
 0x3c4   :  { %503 = vsyncpa [#allocation7], 1 }
 0x3c5   :  { %504 = vsyncpa [#allocation5], 1 }
 0x3c6   :  { %506 = vsyncpa [#allocation5 + $0x1], 1 }

</bundles_post_ra>
